<compile_context>
chip_gen: v7x
topology: tpu7x:2x2x1
jax: 0.10.0
libtpu: 0.0.40
codegen_flags: <defaults>
</compile_context>

<pallas_src>
import functools

import numpy as np
import jax
import jax.numpy as jnp
from jax.experimental import pallas as pl
from jax.experimental.pallas import tpu as pltpu

K_REL = 4            # rel_state feature size (state[:, :, 0:4])
TARGET_ROWS = 128    # rows (= bb*t) per grid step.  128 fills the lane dim and
                     # the MXU M on every generation; keep it at 128 everywhere —
                     # the softmax work (the real bottleneck) scales with rows.


# ----------------------------------------------------------------------------
# Pallas kernel: one batch block (bb batch elements, rows = bb*t) per grid step.
# ----------------------------------------------------------------------------
def relq_kernel(state_ref, action_ref, mask_ref,
                wpvs_ref, wpva_ref,
                w1h_ref, w1s_ref, w1a_ref, b1_ref,
                w2_ref, b2_ref, wo_ref, bo_ref,
                out_ref, *, approx_recip):
    k = K_REL
    bb, t, sd = state_ref.shape
    ad = action_ref.shape[2]
    num_heads = w1h_ref.shape[0]
    hk = num_heads * k
    rows = bb * t

    st = state_ref[...].reshape(rows, sd).astype(jnp.float32)
    ac = action_ref[...].reshape(rows, ad).astype(jnp.float32)
    s4 = st[:, :k]                        # rel_state_init rows, (rows, 4)
    mask_add = mask_ref[...]              # 0 same-batch off-diag, -1e30 elsewhere

    cdt = w1s_ref.dtype                   # MXU operand dtype (bf16 default, f32 exact)

    # Fused projections for all heads in one small matmul (split over state /
    # action so no lane-narrow concat is built):
    #   pv[:,  h*4:(h+1)*4]       = q_state @ (Wq_h.T @ Wk_h) / sqrt(4)   (p_h)
    #   pv[:, hk+h*4:hk+(h+1)*4]  = s4 @ Wv_h.T                           (v4_h)
    pv = (jnp.dot(st, wpvs_ref[...], preferred_element_type=jnp.float32)
          + jnp.dot(ac, wpva_ref[...], preferred_element_type=jnp.float32))

    s4_c = s4.astype(cdt)                 # score-matmul operand (softmax-safe)

    # MLP layer 1 accumulated per source — W1 is split, no concatenation.
    h1 = (jnp.dot(st.astype(cdt), w1s_ref[...], preferred_element_type=jnp.float32)
          + jnp.dot(ac.astype(cdt), w1a_ref[...], preferred_element_type=jnp.float32))

    for hd in range(num_heads):
        p_h = pv[:, hd * k:(hd + 1) * k]                   # (rows, 4)
        v4_h = pv[:, hk + hd * k:hk + (hd + 1) * k]        # (rows, 4)

        # score[i, j] = ((s4[j]-s4[i]) @ Wk_h.T) . q_h[i] / sqrt(4)
        #             = p_h[i] . s4[j]   (+ a per-row constant absorbed by softmax)
        cross = jax.lax.dot_general(p_h.astype(cdt), s4_c,
                                    (((1,), (1,)), ((), ())),
                                    preferred_element_type=jnp.float32)  # (rows, rows)
        scores = cross + mask_add
        m = jnp.max(scores, axis=-1, keepdims=True)
        e = jnp.exp(scores - m)
        denom = jnp.sum(e, axis=-1, keepdims=True)
        w = e * pl.reciprocal(denom, approx=approx_recip)                # (rows, rows)

        # x[i] = sum_j w[i,j]*(v4[j]-v4[i]) = (w @ v4)[i] - v4[i]
        # (masked entries contribute exactly 0; row sums are 1 up to ~2^-12 when
        #  approx_recip=True).  Keep this matmul in f32.
        x_h = jnp.dot(w, v4_h, preferred_element_type=jnp.float32) - v4_h  # (rows, 4)
        h1 = h1 + jnp.dot(x_h.astype(cdt), w1h_ref[hd],
                          preferred_element_type=jnp.float32)

    h1 = jnp.maximum(h1 + b1_ref[...], 0.0)
    h2 = jnp.maximum(jnp.dot(h1.astype(cdt), w2_ref[...],
                             preferred_element_type=jnp.float32) + b2_ref[...], 0.0)

    # Value head as a VPU/XLU lane reduction written into a lane-dense (1, rows)
    # slab (avoids an N=1 matmul + masked narrow store).
    val = jnp.sum(h2 * wo_ref[...], axis=-1) + bo_ref[0]    # (rows,)
    out_ref[0, 0, :] = val.astype(out_ref.dtype)


# ----------------------------------------------------------------------------
# Parameter init (deterministic, PyTorch-default-like bounds) and packing.
# ----------------------------------------------------------------------------
def init_params(key, state_dim, action_dim, num_heads=3, hidden_dim=256):
    k = K_REL
    in_attn = state_dim + action_dim
    in_dim = k * num_heads + in_attn
    ks = jax.random.split(key, 9)

    def u(kk, shape, bound):
        return jax.random.uniform(kk, shape, jnp.float32, -bound, bound)

    return dict(
        wq=u(ks[0], (k * num_heads, in_attn), 1.0 / np.sqrt(in_attn)),
        wk=u(ks[1], (k * num_heads, k), 1.0 / np.sqrt(k)),
        wv=u(ks[2], (k * num_heads, k), 1.0 / np.sqrt(k)),
        w1=u(ks[3], (hidden_dim, in_dim), 1.0 / np.sqrt(in_dim)),
        b1=u(ks[4], (hidden_dim,), 1.0 / np.sqrt(in_dim)),
        w2=u(ks[5], (hidden_dim, hidden_dim), 1.0 / np.sqrt(hidden_dim)),
        b2=u(ks[6], (hidden_dim,), 1.0 / np.sqrt(hidden_dim)),
        wo=u(ks[7], (1, hidden_dim), 0.003),
        bo=u(ks[8], (1,), 0.003),
    )


def pack_params(p, state_dim, action_dim, num_heads, hidden_dim, use_bf16=True):
    """Pack/pre-transform weights once (outside the per-step forward).

    use_bf16=True is the default on ALL generations (v5e's MXU is bf16-native;
    f32 MXU operands cost ~3x passes).  Accumulation is always f32.
    """
    k, h, sd, ad = K_REL, num_heads, state_dim, action_dim
    assert sd >= k, "module requires state_dim >= 4 (uses state[:, :, 0:4])"
    hk = h * k
    inv_sqrt_k = 1.0 / np.sqrt(k)

    wq, wk, wv = p["wq"], p["wk"], p["wv"]
    wqk_cols, wvt_cols = [], []
    for hd in range(h):
        wq_h = wq[hd * k:(hd + 1) * k, :]      # (k, sd+ad)
        wk_h = wk[hd * k:(hd + 1) * k, :]      # (k, k)
        wv_h = wv[hd * k:(hd + 1) * k, :]      # (k, k)
        # 1/sqrt(k) folded here -> no per-tile multiply in the kernel.
        wqk_cols.append((wq_h.T @ wk_h) * inv_sqrt_k)      # (sd+ad, k)
        wvt_cols.append(wv_h.T)                            # (k, k)
    wqk_all = jnp.concatenate(wqk_cols, axis=1)            # (sd+ad, hk)
    wvt_all = jnp.concatenate(wvt_cols, axis=1)            # (k, hk)

    # Split the fused projection over state / action rows (kernel never concats).
    v_state = jnp.zeros((sd, hk), jnp.float32).at[:k, :].set(wvt_all)
    wpv_state = jnp.concatenate([wqk_all[:sd], v_state], axis=1)            # (sd, 2hk)
    wpv_action = jnp.concatenate([wqk_all[sd:], jnp.zeros((ad, hk), jnp.float32)],
                                 axis=1)                                    # (ad, 2hk)

    mm_dtype = jnp.bfloat16 if use_bf16 else jnp.float32
    w1t = p["w1"].T                                        # (hk+sd+ad, hidden)
    w1_attn = w1t[:hk].reshape(h, k, hidden_dim).astype(mm_dtype)   # per-head blocks
    w1_state = w1t[hk:hk + sd].astype(mm_dtype)
    w1_action = w1t[hk + sd:].astype(mm_dtype)

    return (wpv_state.astype(jnp.float32),
            wpv_action.astype(jnp.float32),
            w1_attn, w1_state, w1_action,
            p["b1"].reshape(1, hidden_dim).astype(jnp.float32),
            p["w2"].T.astype(mm_dtype),                    # (hidden, hidden)
            p["b2"].reshape(1, hidden_dim).astype(jnp.float32),
            p["wo"].reshape(1, hidden_dim).astype(jnp.float32),
            p["bo"].reshape(1).astype(jnp.float32))        # SMEM scalar


# ----------------------------------------------------------------------------
# Wrapper: batch-blocked grid, jitted end to end.
# ----------------------------------------------------------------------------
@functools.partial(jax.jit, static_argnames=("approx_recip", "batch_block"))
def rel_transformer_q(state, action, packed, *, approx_recip=True, batch_block=None):
    """state: (b, t, sd), action: (b, t, ad) -> (b, t, 1) float32."""
    (wpv_s, wpv_a, w1_attn, w1_s, w1_a, b1, w2_t, b2, wo, bo) = packed
    b, t, sd = state.shape
    ad = action.shape[-1]
    num_heads, _, hidden_dim = w1_attn.shape
    hk = num_heads * K_REL
    in_dim = hk + sd + ad

    if batch_block is not None:
        bb = batch_block
    else:
        bb_full = max(1, TARGET_ROWS // t)
        # v7x: the "parallel" grid axis is what shards across the 2 TensorCores;
        # for small batches shrink the block so the grid has >= 2 steps.
        bb = bb_full if b > bb_full else max(1, -(-b // 2))
    nb = pl.cdiv(b, bb)
    b_pad = nb * bb
    if b_pad != b:                                   # zero-pad batch to multiple of bb
        pad = ((0, b_pad - b), (0, 0), (0, 0))
        state = jnp.pad(state, pad)
        action = jnp.pad(action, pad)
    rows = bb * t

    # Additive attention mask for the shared (rows, rows) score matrix:
    # 0 where (same batch element and j != i), -1e30 elsewhere.  Static constant;
    # kept as an input (it stays VMEM-resident — cheaper than regenerating per step
    # on the already-saturated VPU).
    r = np.arange(rows)
    valid = ((r[:, None] // t) == (r[None, :] // t)) & (r[:, None] != r[None, :])
    mask_add = jnp.asarray(np.where(valid, 0.0, -1e30).astype(np.float32))

    nbytes = lambda a: a.size * a.dtype.itemsize
    weight_bytes = sum(nbytes(a) for a in (wpv_s, wpv_a, w1_attn, w1_s, w1_a,
                                           b1, w2_t, b2, wo, bo))
    cost = pl.CostEstimate(
        flops=int(b_pad * t * (2 * (sd + ad) * 2 * hk
                               + num_heads * 4 * K_REL * rows
                               + 2 * (in_dim * hidden_dim
                                      + hidden_dim * hidden_dim + hidden_dim))),
        transcendentals=int(num_heads * b_pad * t * rows),
        # Weights and the mask have constant block indices -> fetched once, not nb x.
        bytes_accessed=int(nbytes(state) + nbytes(action) + 4 * b_pad * t
                           + nbytes(mask_add) + weight_bytes))

    kernel = functools.partial(relq_kernel, approx_recip=approx_recip)

    out = pl.pallas_call(
        kernel,
        out_shape=jax.ShapeDtypeStruct((nb, 1, rows), jnp.float32),
        grid_spec=pltpu.PrefetchScalarGridSpec(
            num_scalar_prefetch=0,
            grid=(nb,),
            in_specs=[
                pl.BlockSpec((bb, t, sd), lambda i: (i, 0, 0)),             # state
                pl.BlockSpec((bb, t, ad), lambda i: (i, 0, 0)),             # action
                pl.BlockSpec((rows, rows), lambda i: (0, 0)),               # mask
                pl.BlockSpec((sd, 2 * hk), lambda i: (0, 0)),               # proj (state)
                pl.BlockSpec((ad, 2 * hk), lambda i: (0, 0)),               # proj (action)
                pl.BlockSpec((num_heads, K_REL, hidden_dim),
                             lambda i: (0, 0, 0)),                          # W1 attn blocks
                pl.BlockSpec((sd, hidden_dim), lambda i: (0, 0)),           # W1 state
                pl.BlockSpec((ad, hidden_dim), lambda i: (0, 0)),           # W1 action
                pl.BlockSpec((1, hidden_dim), lambda i: (0, 0)),            # b1
                pl.BlockSpec((hidden_dim, hidden_dim), lambda i: (0, 0)),   # W2^T
                pl.BlockSpec((1, hidden_dim), lambda i: (0, 0)),            # b2
                pl.BlockSpec((1, hidden_dim), lambda i: (0, 0)),            # wo row
                pl.BlockSpec(memory_space=pltpu.MemorySpace.SMEM),          # bo scalar
            ],
            out_specs=pl.BlockSpec((1, 1, rows), lambda i: (i, 0, 0)),
        ),
        compiler_params=pltpu.CompilerParams(
            dimension_semantics=("parallel",)),
        cost_estimate=cost,
    )(state, action, mask_add, wpv_s, wpv_a, w1_attn, w1_s, w1_a, b1,
      w2_t, b2, wo, bo)

    return out.reshape(b_pad, t)[:b, :, None]


# ----------------------------------------------------------------------------
# NumPy reference that mirrors the PyTorch forward line by line.
# ----------------------------------------------------------------------------
def reference_numpy(state, action, p, num_heads):
    st, ac = state.astype(np.float32), action.astype(np.float32)
    b, t, sd = st.shape
    h, k = num_heads, K_REL
    q_state = np.concatenate([st, ac], axis=-1)
    r0 = st[:, :, :k]
    rel_full = r0[:, None, :, :] - r0[:, :, None, :]                 # (b,t,t,k)
    mask = ~np.eye(t, dtype=bool)
    rel = rel_full[:, mask, :].reshape(b, t, t - 1, k)

    queries = q_state @ p["wq"].T
    keys = rel.reshape(b, t * (t - 1), k) @ p["wk"].T
    values = rel.reshape(b, t * (t - 1), k) @ p["wv"].T
    queries = queries.reshape(b, t, h, k).transpose(0, 2, 1, 3).reshape(b * h, t, k)
    keys = keys.reshape(b, t * (t - 1), h, k).transpose(0, 2, 1, 3).reshape(b * h, t * (t - 1), k)
    values = values.reshape(b, t * (t - 1), h, k).transpose(0, 2, 1, 3).reshape(b * h, t * (t - 1), k)
    queries = queries.reshape(b * h, t, 1, k).transpose(0, 1, 3, 2)  # (bh,t,k,1)
    keys = keys.reshape(b * h, t, t - 1, k)
    values = values.reshape(b * h, t, t - 1, k)

    w_prime = np.matmul(keys, queries) / np.sqrt(k)                  # (bh,t,t-1,1)
    w_prime = w_prime - w_prime.max(axis=2, keepdims=True)
    e = np.exp(w_prime)
    w = e / e.sum(axis=2, keepdims=True)
    x = np.matmul(w.transpose(0, 1, 3, 2), values).reshape(b * h, t, k)
    x = x.reshape(b, h, t, k).transpose(0, 2, 1, 3).reshape(b, t, h * k)
    x = np.concatenate([x, q_state], axis=-1)
    x = np.maximum(x @ p["w1"].T + p["b1"], 0.0)
    x = np.maximum(x @ p["w2"].T + p["b2"], 0.0)
    return x @ p["wo"].T + p["bo"]


if __name__ == "__main__":
    STATE_DIM, ACTION_DIM = 6, 2
    NUM_HEADS, HIDDEN_DIM = 3, 32       # num_layers fixed at module default (2)

    key = jax.random.PRNGKey(0)
    k_p = jax.random.fold_in(key, 7)
    params = init_params(k_p, STATE_DIM, ACTION_DIM, NUM_HEADS, HIDDEN_DIM)
    np_params = {k_: np.asarray(v) for k_, v in params.items()}

    packed_f32 = pack_params(params, STATE_DIM, ACTION_DIM, NUM_HEADS, HIDDEN_DIM,
                             use_bf16=False)
    packed_bf16 = pack_params(params, STATE_DIM, ACTION_DIM, NUM_HEADS, HIDDEN_DIM,
                              use_bf16=True)

    def check(b, t, packed, approx, tol):
        ks, ka = jax.random.split(jax.random.fold_in(key, 1000 * b + t), 2)
        state = jax.random.normal(ks, (b, t, STATE_DIM), jnp.float32)
        action = jax.random.normal(ka, (b, t, ACTION_DIM), jnp.float32)
        out = rel_transformer_q(state, action, packed, approx_recip=approx)
        out = jax.block_until_ready(out)
        assert out.shape == (b, t, 1)
        ref = reference_numpy(np.asarray(state), np.asarray(action),
                              np_params, NUM_HEADS)
        err = np.max(np.abs(np.asarray(out) - ref)) / (np.max(np.abs(ref)) + 1e-8)
        assert err < tol, f"kernel/reference mismatch b={b}, t={t}: rel err = {err}"

    # Precise path: f32 MXU operands, exact reciprocal (small batch -> 2 grid steps).
    check(2, 8, packed_f32, approx=False, tol=5e-3)
    # Default fast path: bf16 MXU operands (all generations) + approx EUP reciprocal.
    check(2, 8, packed_bf16, approx=True, tol=5e-2)
    # Larger batch: exercises rows=128 blocks, batch padding and the 2-step grid.
    check(20, 8, packed_bf16, approx=True, tol=5e-2)

    print("KERNEL_OK")
</pallas_src>

<mosaic_0001>
module attributes {stable_mosaic.version = 11 : i64} {
  func.func @relq_kernel(%arg0: i32, %arg1: memref<1x8x6xf32, #tpu.memory_space<vmem>>, %arg2: memref<1x8x2xf32, #tpu.memory_space<vmem>>, %arg3: memref<8x8xf32, #tpu.memory_space<vmem>>, %arg4: memref<6x24xf32, #tpu.memory_space<vmem>>, %arg5: memref<2x24xf32, #tpu.memory_space<vmem>>, %arg6: memref<3x4x32xf32, #tpu.memory_space<vmem>>, %arg7: memref<6x32xf32, #tpu.memory_space<vmem>>, %arg8: memref<2x32xf32, #tpu.memory_space<vmem>>, %arg9: memref<1x32xf32, #tpu.memory_space<vmem>>, %arg10: memref<32x32xf32, #tpu.memory_space<vmem>>, %arg11: memref<1x32xf32, #tpu.memory_space<vmem>>, %arg12: memref<1x32xf32, #tpu.memory_space<vmem>>, %arg13: memref<1xf32, #tpu.memory_space<smem>>, %arg14: memref<1x1x8xf32, #tpu.memory_space<vmem>>) attributes {dimension_semantics = [#tpu.dimension_semantics<parallel>], iteration_bounds = array<i64: 2>, scalar_prefetch = 0 : i64, scratch_operands = 0 : i64, tpu.core_type = #tpu.core_type<tc>, window_params = [{transform_indices = @transform_0, window_bounds = array<i64: 1, 8, 6>}, {transform_indices = @transform_1, window_bounds = array<i64: 1, 8, 2>}, {pipeline_mode = #tpu.pipeline_mode<synchronous>, transform_indices = @transform_2, window_bounds = array<i64: 8, 8>}, {pipeline_mode = #tpu.pipeline_mode<synchronous>, transform_indices = @transform_3, window_bounds = array<i64: 6, 24>}, {pipeline_mode = #tpu.pipeline_mode<synchronous>, transform_indices = @transform_4, window_bounds = array<i64: 2, 24>}, {pipeline_mode = #tpu.pipeline_mode<synchronous>, transform_indices = @transform_5, window_bounds = array<i64: 3, 4, 32>}, {pipeline_mode = #tpu.pipeline_mode<synchronous>, transform_indices = @transform_6, window_bounds = array<i64: 6, 32>}, {pipeline_mode = #tpu.pipeline_mode<synchronous>, transform_indices = @transform_7, window_bounds = array<i64: 2, 32>}, {pipeline_mode = #tpu.pipeline_mode<synchronous>, transform_indices = @transform_8, window_bounds = array<i64: 1, 32>}, {pipeline_mode = #tpu.pipeline_mode<synchronous>, transform_indices = @transform_9, window_bounds = array<i64: 32, 32>}, {pipeline_mode = #tpu.pipeline_mode<synchronous>, transform_indices = @transform_10, window_bounds = array<i64: 1, 32>}, {pipeline_mode = #tpu.pipeline_mode<synchronous>, transform_indices = @transform_11, window_bounds = array<i64: 1, 32>}, {transform_indices = @transform_12, window_bounds = array<i64: 1>}, {transform_indices = @transform_13, window_bounds = array<i64: 1, 1, 8>}]} {
    %c0 = arith.constant 0 : index
    %c0_0 = arith.constant 0 : index
    %c0_1 = arith.constant 0 : index
    %0 = vector.load %arg1[%c0, %c0_0, %c0_1] : memref<1x8x6xf32, #tpu.memory_space<vmem>>, vector<1x8x6xf32>
    %1 = vector.shape_cast %0 : vector<1x8x6xf32> to vector<8x6xf32>
    %c0_2 = arith.constant 0 : index
    %c0_3 = arith.constant 0 : index
    %c0_4 = arith.constant 0 : index
    %2 = vector.load %arg2[%c0_2, %c0_3, %c0_4] : memref<1x8x2xf32, #tpu.memory_space<vmem>>, vector<1x8x2xf32>
    %3 = vector.shape_cast %2 : vector<1x8x2xf32> to vector<8x2xf32>
    %4 = vector.extract_strided_slice %1 {offsets = [0, 0], sizes = [8, 4], strides = [1, 1]} : vector<8x6xf32> to vector<8x4xf32>
    %c0_5 = arith.constant 0 : index
    %c0_6 = arith.constant 0 : index
    %5 = vector.load %arg3[%c0_5, %c0_6] : memref<8x8xf32, #tpu.memory_space<vmem>>, vector<8x8xf32>
    %c0_7 = arith.constant 0 : index
    %c0_8 = arith.constant 0 : index
    %6 = vector.load %arg4[%c0_7, %c0_8] : memref<6x24xf32, #tpu.memory_space<vmem>>, vector<6x24xf32>
    %cst = arith.constant dense<0.000000e+00> : vector<8x24xf32>
    %7 = tpu.matmul %1, %6, %cst {dimension_numbers = #tpu.dot_dimension_numbers<[1], [0], [0], [1], [0, 0, 1, 1], [], []>} : vector<8x6xf32>, vector<6x24xf32>, vector<8x24xf32> -> vector<8x24xf32>
    %c0_9 = arith.constant 0 : index
    %c0_10 = arith.constant 0 : index
    %8 = vector.load %arg5[%c0_9, %c0_10] : memref<2x24xf32, #tpu.memory_space<vmem>>, vector<2x24xf32>
    %cst_11 = arith.constant dense<0.000000e+00> : vector<8x24xf32>
    %9 = tpu.matmul %3, %8, %cst_11 {dimension_numbers = #tpu.dot_dimension_numbers<[1], [0], [0], [1], [0, 0, 1, 1], [], []>} : vector<8x2xf32>, vector<2x24xf32>, vector<8x24xf32> -> vector<8x24xf32>
    %10 = arith.addf %7, %9 : vector<8x24xf32>
    %c0_12 = arith.constant 0 : index
    %c0_13 = arith.constant 0 : index
    %11 = vector.load %arg7[%c0_12, %c0_13] : memref<6x32xf32, #tpu.memory_space<vmem>>, vector<6x32xf32>
    %cst_14 = arith.constant dense<0.000000e+00> : vector<8x32xf32>
    %12 = tpu.matmul %1, %11, %cst_14 {dimension_numbers = #tpu.dot_dimension_numbers<[1], [0], [0], [1], [0, 0, 1, 1], [], []>} : vector<8x6xf32>, vector<6x32xf32>, vector<8x32xf32> -> vector<8x32xf32>
    %c0_15 = arith.constant 0 : index
    %c0_16 = arith.constant 0 : index
    %13 = vector.load %arg8[%c0_15, %c0_16] : memref<2x32xf32, #tpu.memory_space<vmem>>, vector<2x32xf32>
    %cst_17 = arith.constant dense<0.000000e+00> : vector<8x32xf32>
    %14 = tpu.matmul %3, %13, %cst_17 {dimension_numbers = #tpu.dot_dimension_numbers<[1], [0], [0], [1], [0, 0, 1, 1], [], []>} : vector<8x2xf32>, vector<2x32xf32>, vector<8x32xf32> -> vector<8x32xf32>
    %15 = arith.addf %12, %14 : vector<8x32xf32>
    %16 = vector.extract_strided_slice %10 {offsets = [0, 0], sizes = [8, 4], strides = [1, 1]} : vector<8x24xf32> to vector<8x4xf32>
    %17 = vector.extract_strided_slice %10 {offsets = [0, 12], sizes = [8, 4], strides = [1, 1]} : vector<8x24xf32> to vector<8x4xf32>
    %cst_18 = arith.constant dense<0.000000e+00> : vector<8x8xf32>
    %18 = tpu.matmul %16, %4, %cst_18 {dimension_numbers = #tpu.dot_dimension_numbers<[1], [1], [0], [0], [0, 0, 1, 0], [], []>} : vector<8x4xf32>, vector<8x4xf32>, vector<8x8xf32> -> vector<8x8xf32>
    %19 = arith.addf %18, %5 : vector<8x8xf32>
    %cst_19 = arith.constant dense<0xFF800000> : vector<8xf32>
    %20 = vector.multi_reduction <maximumf>, %19, %cst_19 [1] : vector<8x8xf32> to vector<8xf32>
    %21 = vector.shape_cast %20 : vector<8xf32> to vector<8x1xf32>
    %22 = vector.broadcast %21 : vector<8x1xf32> to vector<8x8xf32>
    %23 = arith.subf %19, %22 : vector<8x8xf32>
    %24 = math.exp %23 : vector<8x8xf32>
    %cst_20 = arith.constant dense<0.000000e+00> : vector<8xf32>
    %25 = vector.multi_reduction <add>, %24, %cst_20 [1] : vector<8x8xf32> to vector<8xf32>
    %26 = vector.shape_cast %25 : vector<8xf32> to vector<8x1xf32>
    %27 = tpu.reciprocal %26 : vector<8x1xf32> -> vector<8x1xf32>
    %28 = vector.broadcast %27 : vector<8x1xf32> to vector<8x8xf32>
    %29 = arith.mulf %24, %28 : vector<8x8xf32>
    %cst_21 = arith.constant dense<0.000000e+00> : vector<8x4xf32>
    %30 = tpu.matmul %29, %17, %cst_21 {dimension_numbers = #tpu.dot_dimension_numbers<[1], [0], [0], [1], [0, 0, 1, 1], [], []>} : vector<8x8xf32>, vector<8x4xf32>, vector<8x4xf32> -> vector<8x4xf32>
    %31 = arith.subf %30, %17 : vector<8x4xf32>
    %c0_22 = arith.constant 0 : index
    %c0_23 = arith.constant 0 : index
    %c0_24 = arith.constant 0 : index
    %32 = vector.load %arg6[%c0_22, %c0_23, %c0_24] : memref<3x4x32xf32, #tpu.memory_space<vmem>>, vector<1x4x32xf32>
    %33 = vector.shape_cast %32 : vector<1x4x32xf32> to vector<4x32xf32>
    %cst_25 = arith.constant dense<0.000000e+00> : vector<8x32xf32>
    %34 = tpu.matmul %31, %33, %cst_25 {dimension_numbers = #tpu.dot_dimension_numbers<[1], [0], [0], [1], [0, 0, 1, 1], [], []>} : vector<8x4xf32>, vector<4x32xf32>, vector<8x32xf32> -> vector<8x32xf32>
    %35 = arith.addf %15, %34 : vector<8x32xf32>
    %36 = vector.extract_strided_slice %10 {offsets = [0, 4], sizes = [8, 4], strides = [1, 1]} : vector<8x24xf32> to vector<8x4xf32>
    %37 = vector.extract_strided_slice %10 {offsets = [0, 16], sizes = [8, 4], strides = [1, 1]} : vector<8x24xf32> to vector<8x4xf32>
    %cst_26 = arith.constant dense<0.000000e+00> : vector<8x8xf32>
    %38 = tpu.matmul %36, %4, %cst_26 {dimension_numbers = #tpu.dot_dimension_numbers<[1], [1], [0], [0], [0, 0, 1, 0], [], []>} : vector<8x4xf32>, vector<8x4xf32>, vector<8x8xf32> -> vector<8x8xf32>
    %39 = arith.addf %38, %5 : vector<8x8xf32>
    %cst_27 = arith.constant dense<0xFF800000> : vector<8xf32>
    %40 = vector.multi_reduction <maximumf>, %39, %cst_27 [1] : vector<8x8xf32> to vector<8xf32>
    %41 = vector.shape_cast %40 : vector<8xf32> to vector<8x1xf32>
    %42 = vector.broadcast %41 : vector<8x1xf32> to vector<8x8xf32>
    %43 = arith.subf %39, %42 : vector<8x8xf32>
    %44 = math.exp %43 : vector<8x8xf32>
    %cst_28 = arith.constant dense<0.000000e+00> : vector<8xf32>
    %45 = vector.multi_reduction <add>, %44, %cst_28 [1] : vector<8x8xf32> to vector<8xf32>
    %46 = vector.shape_cast %45 : vector<8xf32> to vector<8x1xf32>
    %47 = tpu.reciprocal %46 : vector<8x1xf32> -> vector<8x1xf32>
    %48 = vector.broadcast %47 : vector<8x1xf32> to vector<8x8xf32>
    %49 = arith.mulf %44, %48 : vector<8x8xf32>
    %cst_29 = arith.constant dense<0.000000e+00> : vector<8x4xf32>
    %50 = tpu.matmul %49, %37, %cst_29 {dimension_numbers = #tpu.dot_dimension_numbers<[1], [0], [0], [1], [0, 0, 1, 1], [], []>} : vector<8x8xf32>, vector<8x4xf32>, vector<8x4xf32> -> vector<8x4xf32>
    %51 = arith.subf %50, %37 : vector<8x4xf32>
    %c1 = arith.constant 1 : index
    %c0_30 = arith.constant 0 : index
    %c0_31 = arith.constant 0 : index
    %52 = vector.load %arg6[%c1, %c0_30, %c0_31] : memref<3x4x32xf32, #tpu.memory_space<vmem>>, vector<1x4x32xf32>
    %53 = vector.shape_cast %52 : vector<1x4x32xf32> to vector<4x32xf32>
    %cst_32 = arith.constant dense<0.000000e+00> : vector<8x32xf32>
    %54 = tpu.matmul %51, %53, %cst_32 {dimension_numbers = #tpu.dot_dimension_numbers<[1], [0], [0], [1], [0, 0, 1, 1], [], []>} : vector<8x4xf32>, vector<4x32xf32>, vector<8x32xf32> -> vector<8x32xf32>
    %55 = arith.addf %35, %54 : vector<8x32xf32>
    %56 = vector.extract_strided_slice %10 {offsets = [0, 8], sizes = [8, 4], strides = [1, 1]} : vector<8x24xf32> to vector<8x4xf32>
    %57 = vector.extract_strided_slice %10 {offsets = [0, 20], sizes = [8, 4], strides = [1, 1]} : vector<8x24xf32> to vector<8x4xf32>
    %cst_33 = arith.constant dense<0.000000e+00> : vector<8x8xf32>
    %58 = tpu.matmul %56, %4, %cst_33 {dimension_numbers = #tpu.dot_dimension_numbers<[1], [1], [0], [0], [0, 0, 1, 0], [], []>} : vector<8x4xf32>, vector<8x4xf32>, vector<8x8xf32> -> vector<8x8xf32>
    %59 = arith.addf %58, %5 : vector<8x8xf32>
    %cst_34 = arith.constant dense<0xFF800000> : vector<8xf32>
    %60 = vector.multi_reduction <maximumf>, %59, %cst_34 [1] : vector<8x8xf32> to vector<8xf32>
    %61 = vector.shape_cast %60 : vector<8xf32> to vector<8x1xf32>
    %62 = vector.broadcast %61 : vector<8x1xf32> to vector<8x8xf32>
    %63 = arith.subf %59, %62 : vector<8x8xf32>
    %64 = math.exp %63 : vector<8x8xf32>
    %cst_35 = arith.constant dense<0.000000e+00> : vector<8xf32>
    %65 = vector.multi_reduction <add>, %64, %cst_35 [1] : vector<8x8xf32> to vector<8xf32>
    %66 = vector.shape_cast %65 : vector<8xf32> to vector<8x1xf32>
    %67 = tpu.reciprocal %66 : vector<8x1xf32> -> vector<8x1xf32>
    %68 = vector.broadcast %67 : vector<8x1xf32> to vector<8x8xf32>
    %69 = arith.mulf %64, %68 : vector<8x8xf32>
    %cst_36 = arith.constant dense<0.000000e+00> : vector<8x4xf32>
    %70 = tpu.matmul %69, %57, %cst_36 {dimension_numbers = #tpu.dot_dimension_numbers<[1], [0], [0], [1], [0, 0, 1, 1], [], []>} : vector<8x8xf32>, vector<8x4xf32>, vector<8x4xf32> -> vector<8x4xf32>
    %71 = arith.subf %70, %57 : vector<8x4xf32>
    %c2 = arith.constant 2 : index
    %c0_37 = arith.constant 0 : index
    %c0_38 = arith.constant 0 : index
    %72 = vector.load %arg6[%c2, %c0_37, %c0_38] : memref<3x4x32xf32, #tpu.memory_space<vmem>>, vector<1x4x32xf32>
    %73 = vector.shape_cast %72 : vector<1x4x32xf32> to vector<4x32xf32>
    %cst_39 = arith.constant dense<0.000000e+00> : vector<8x32xf32>
    %74 = tpu.matmul %71, %73, %cst_39 {dimension_numbers = #tpu.dot_dimension_numbers<[1], [0], [0], [1], [0, 0, 1, 1], [], []>} : vector<8x4xf32>, vector<4x32xf32>, vector<8x32xf32> -> vector<8x32xf32>
    %75 = arith.addf %55, %74 : vector<8x32xf32>
    %c0_40 = arith.constant 0 : index
    %c0_41 = arith.constant 0 : index
    %76 = vector.load %arg9[%c0_40, %c0_41] : memref<1x32xf32, #tpu.memory_space<vmem>>, vector<1x32xf32>
    %77 = vector.broadcast %76 : vector<1x32xf32> to vector<8x32xf32>
    %78 = arith.addf %75, %77 : vector<8x32xf32>
    %cst_42 = arith.constant 0.000000e+00 : f32
    %79 = vector.broadcast %cst_42 : f32 to vector<8x32xf32>
    %80 = arith.maximumf %78, %79 : vector<8x32xf32>
    %c0_43 = arith.constant 0 : index
    %c0_44 = arith.constant 0 : index
    %81 = vector.load %arg10[%c0_43, %c0_44] : memref<32x32xf32, #tpu.memory_space<vmem>>, vector<32x32xf32>
    %cst_45 = arith.constant dense<0.000000e+00> : vector<8x32xf32>
    %82 = tpu.matmul %80, %81, %cst_45 {dimension_numbers = #tpu.dot_dimension_numbers<[1], [0], [0], [1], [0, 0, 1, 1], [], []>} : vector<8x32xf32>, vector<32x32xf32>, vector<8x32xf32> -> vector<8x32xf32>
    %c0_46 = arith.constant 0 : index
    %c0_47 = arith.constant 0 : index
    %83 = vector.load %arg11[%c0_46, %c0_47] : memref<1x32xf32, #tpu.memory_space<vmem>>, vector<1x32xf32>
    %84 = vector.broadcast %83 : vector<1x32xf32> to vector<8x32xf32>
    %85 = arith.addf %82, %84 : vector<8x32xf32>
    %cst_48 = arith.constant 0.000000e+00 : f32
    %86 = vector.broadcast %cst_48 : f32 to vector<8x32xf32>
    %87 = arith.maximumf %85, %86 : vector<8x32xf32>
    %c0_49 = arith.constant 0 : index
    %c0_50 = arith.constant 0 : index
    %88 = vector.load %arg12[%c0_49, %c0_50] : memref<1x32xf32, #tpu.memory_space<vmem>>, vector<1x32xf32>
    %89 = vector.broadcast %88 : vector<1x32xf32> to vector<8x32xf32>
    %90 = arith.mulf %87, %89 : vector<8x32xf32>
    %cst_51 = arith.constant dense<0.000000e+00> : vector<8xf32>
    %91 = vector.multi_reduction <add>, %90, %cst_51 [1] : vector<8x32xf32> to vector<8xf32>
    %c0_52 = arith.constant 0 : index
    %92 = memref.load %arg13[%c0_52] : memref<1xf32, #tpu.memory_space<smem>>
    %93 = vector.broadcast %92 : f32 to vector<8xf32>
    %94 = arith.addf %91, %93 : vector<8xf32>
    %c0_53 = arith.constant 0 : index
    %c0_54 = arith.constant 0 : index
    %c0_55 = arith.constant 0 : index
    %95 = vector.load %arg14[%c0_53, %c0_54, %c0_55] : memref<1x1x8xf32, #tpu.memory_space<vmem>>, vector<1x1x8xf32>
    %96 = vector.shape_cast %95 : vector<1x1x8xf32> to vector<8xf32>
    %97 = vector.shape_cast %94 : vector<8xf32> to vector<1x1x8xf32>
    tpu.vector_store %arg14[%c0_53, %c0_54, %c0_55], %97 {strides = array<i32>} : memref<1x1x8xf32, #tpu.memory_space<vmem>>, vector<1x1x8xf32>,
    return
  }
  func.func @transform_0(%arg0: i32) -> (i32, i32, i32) {
    %c0_i32 = arith.constant 0 : i32
    %c0_i32_0 = arith.constant 0 : i32
    %c0_i32_1 = arith.constant 0 : i32
    return %arg0, %c0_i32, %c0_i32_0 : i32, i32, i32
  }
  func.func @transform_1(%arg0: i32) -> (i32, i32, i32) {
    %c0_i32 = arith.constant 0 : i32
    %c0_i32_0 = arith.constant 0 : i32
    %c0_i32_1 = arith.constant 0 : i32
    return %arg0, %c0_i32, %c0_i32_0 : i32, i32, i32
  }
  func.func @transform_2(%arg0: i32) -> (i32, i32) {
    %c0_i32 = arith.constant 0 : i32
    %c0_i32_0 = arith.constant 0 : i32
    %c0_i32_1 = arith.constant 0 : i32
    return %c0_i32, %c0_i32_0 : i32, i32
  }
  func.func @transform_3(%arg0: i32) -> (i32, i32) {
    %c0_i32 = arith.constant 0 : i32
    %c0_i32_0 = arith.constant 0 : i32
    %c0_i32_1 = arith.constant 0 : i32
    return %c0_i32, %c0_i32_0 : i32, i32
  }
  func.func @transform_4(%arg0: i32) -> (i32, i32) {
    %c0_i32 = arith.constant 0 : i32
    %c0_i32_0 = arith.constant 0 : i32
    %c0_i32_1 = arith.constant 0 : i32
    return %c0_i32, %c0_i32_0 : i32, i32
  }
  func.func @transform_5(%arg0: i32) -> (i32, i32, i32) {
    %c0_i32 = arith.constant 0 : i32
    %c0_i32_0 = arith.constant 0 : i32
    %c0_i32_1 = arith.constant 0 : i32
    %c0_i32_2 = arith.constant 0 : i32
    return %c0_i32, %c0_i32_0, %c0_i32_1 : i32, i32, i32
  }
  func.func @transform_6(%arg0: i32) -> (i32, i32) {
    %c0_i32 = arith.constant 0 : i32
    %c0_i32_0 = arith.constant 0 : i32
    %c0_i32_1 = arith.constant 0 : i32
    return %c0_i32, %c0_i32_0 : i32, i32
  }
  func.func @transform_7(%arg0: i32) -> (i32, i32) {
    %c0_i32 = arith.constant 0 : i32
    %c0_i32_0 = arith.constant 0 : i32
    %c0_i32_1 = arith.constant 0 : i32
    return %c0_i32, %c0_i32_0 : i32, i32
  }
  func.func @transform_8(%arg0: i32) -> (i32, i32) {
    %c0_i32 = arith.constant 0 : i32
    %c0_i32_0 = arith.constant 0 : i32
    %c0_i32_1 = arith.constant 0 : i32
    return %c0_i32, %c0_i32_0 : i32, i32
  }
  func.func @transform_9(%arg0: i32) -> (i32, i32) {
    %c0_i32 = arith.constant 0 : i32
    %c0_i32_0 = arith.constant 0 : i32
    %c0_i32_1 = arith.constant 0 : i32
    return %c0_i32, %c0_i32_0 : i32, i32
  }
  func.func @transform_10(%arg0: i32) -> (i32, i32) {
    %c0_i32 = arith.constant 0 : i32
    %c0_i32_0 = arith.constant 0 : i32
    %c0_i32_1 = arith.constant 0 : i32
    return %c0_i32, %c0_i32_0 : i32, i32
  }
  func.func @transform_11(%arg0: i32) -> (i32, i32) {
    %c0_i32 = arith.constant 0 : i32
    %c0_i32_0 = arith.constant 0 : i32
    %c0_i32_1 = arith.constant 0 : i32
    return %c0_i32, %c0_i32_0 : i32, i32
  }
  func.func @transform_12(%arg0: i32) -> i32 {
    %c0_i32 = arith.constant 0 : i32
    %c0_i32_0 = arith.constant 0 : i32
    return %c0_i32 : i32
  }
  func.func @transform_13(%arg0: i32) -> (i32, i32, i32) {
    %c0_i32 = arith.constant 0 : i32
    %c0_i32_0 = arith.constant 0 : i32
    %c0_i32_1 = arith.constant 0 : i32
    return %arg0, %c0_i32, %c0_i32_0 : i32, i32, i32
  }
}

</mosaic_0001>

<bundles_post_ra>
// kernel: rel_transformer_q.1
= control target key start
LH: loop header
LB: loop body
LE: loop exit
PB: predicated region body
PF: predicated region fallthrough
CT: control target
= control target key end

     0   :  { %s2281_s0 = inlined_call_operand.vmem [shape: f32[2,8,6], index: 0, kind: input, shape index: {}]   ;;  %s2282_s1 = inlined_call_operand.vmem [shape: f32[2,8,2], index: 1, kind: input, shape index: {}]   ;;  %s2283_s2 = inlined_call_operand.vmem [shape: f32[8,8], index: 2, kind: input, shape index: {}]   ;;  %s2284_s3 = inlined_call_operand.vmem [shape: f32[6,24], index: 3, kind: input, shape index: {}]   ;;  %s2285_s4 = inlined_call_operand.vmem [shape: f32[2,24], index: 4, kind: input, shape index: {}]   ;;  %s2286_s5 = inlined_call_operand.vmem [shape: f32[3,4,32], index: 5, kind: input, shape index: {}]   ;;  %s2287_s6 = inlined_call_operand.vmem [shape: f32[6,32], index: 6, kind: input, shape index: {}]   ;;  %s2288_s7 = inlined_call_operand.vmem [shape: f32[2,32], index: 7, kind: input, shape index: {}]   ;;  %s2289_s8 = inlined_call_operand.vmem [shape: f32[1,32], index: 8, kind: input, shape index: {}]   ;;  %s2290_s9 = inlined_call_operand.vmem [shape: f32[32,32], index: 9, kind: input, shape index: {}]   ;;  %s2291_s10 = inlined_call_operand.vmem [shape: f32[1,32], index: 10, kind: input, shape index: {}]   ;;  %s2292_s11 = inlined_call_operand.vmem [shape: f32[1,32], index: 11, kind: input, shape index: {}]   ;;  %s2293_s12 = inlined_call_operand.<no memory space> [shape: f32[1], index: 12, kind: input, shape index: {}]   ;;  %s2294_s13 = inlined_call_operand.hbm [shape: f32[2,1,8], index: 13, kind: output, shape index: {}]  }
   0x1   :  { %2295 = sst [smem:[#allocation6_spill]] %s2281_s0 }
   0x2   :  { %2296 = sst [smem:[#allocation7_spill]] %s2282_s1 }
   0x3   :  { %18 = sst [smem:[#allocation2]] %s2293_s12 }
   0x4   :  { %19 = vsyncpa [#allocation4], 0 }
   0x5   :  { %21 = vsyncpa [#allocation4 + $0x1], 0  ;;  %s2045_s27 = smov 0   ;;  %s2047_s28 = smov 0  }
   0x6   :  { %s2049_s29 = smov 0   ;;  %s2051_s30 = smov 0  }
   0x7 LB: > { %s2066_s12 = sadd.s32 4294967295, %s1961_s30   ;;  %s1687_s14 = sadd.s32 4294967294, %s1961_s30   ;;  %s1961_s30 = sphi %s2051_s30, %s2304_s30   ;;  %s1957_s29 = sphi %s2049_s29, %s2303_s29   ;;  %s1953_s28 = sphi %s2047_s28, %s2302_s28   ;;  %s1949_s27 = sphi %s2045_s27, %s2301_s27  }
   0x8   : > { %s2070_s15 = sadd.s32 1, %s1961_s30   ;;  %s317_s16 = sadd.s32 1, %s1957_s29 }
   0x9   : > { %s314_s17 = ssub.s32 %s1961_s30, %s2070_s15  ;;  %p327_p0 = scmp.ne.s32.totalorder %s1957_s29, %s1953_s28 }
   0xa   : > { %p315_p1 = scmp.eq.s32.totalorder %s314_s17, 0  ;;  %p328_p2 = scmp.eq.s32.totalorder %s2066_s12, 1 }
   0xb   : > { %p333_p3 = scmp.ne.s32.totalorder %s1953_s28, %s1949_s27  ;;  %p334_p4 = scmp.eq.s32.totalorder %s1687_s14, 1 }
   0xc   : > { %s2081_s18 = scalar_select %p315_p1, %s1957_s29, %s317_s16  }
   0xd   : > { %p2083_p5 = por %p328_p2, %p327_p0  ;;  %p2087_p6 = por %p334_p4, %p333_p3 }
   0xe   : > { %p1690_p7 = scmp.ge.s32.totalorder %s1961_s30, 1  ;;  %p399_p8 = scmp.lt.s32.totalorder %s1961_s30, 3 }
  0x10   : > { %p400_p9 = pnand %p1690_p7, %p399_p8 }
  0x11   : > { %v457_v0 = vld [vmem:[%s2285_s4] sm:$0x3] (!%p400_p9)  ;;  %vm462_vm0 = vcmask (!%p400_p9), 1041408   ;;  %p445_p10 = scmp.lt.s32.totalorder (!%p400_p9), %s2066_s12, 1  ;;  %v1963_v1 = vmov (!%p400_p9), 0.0   ;;  %vm1964_vm1 = vmmov (!%p400_p9), 0  }
  0x12   : > { %403 = sbr.rel (%p400_p9) target bundleno = 2653 (0xa5d), region = 72  ;;  %1756 = vmatprep.subr.mxu0 (!%p400_p9), %v1963_v1  ;;  %1758 = vmatprep.mubr.msk.f32.mxu0 (!%p400_p9), %vm1964_vm1, %v1963_v1  ;;  %vm458_vm2 = vcmask (!%p400_p9), 15360   ;;  %s2299_s1 = sld [smem:[#allocation7_spill]] (!%p400_p9)  ;;  %v456_v2 = vld [vmem:[%s2284_s3] sm:$0x3f] (!%p400_p9)  ;;  %vm540_vm3 = vcmask (!%p400_p9), 1045504  }
  0x13   : > { %1757 = vmatpush3.msk.msra.mxu0 (!%p400_p9), %vm462_vm0, %v457_v0  ;;  %1766 = vmatprep.subr.mxu1 (!%p400_p9), %v1963_v1  ;;  %s2300_s0 = sld [smem:[#allocation6_spill]] (!%p400_p9)  ;;  %vm536_vm4 = vcmask (!%p400_p9), 48128   ;;  %vm762_vm5 = vcmask (!%p400_p9), 31744   ;;  %v615_v5 = vld [vmem:[%s2288_s7] sm:$0x3] (!%p400_p9)  ;;  %s1965_s16 = smov (!%p400_p9), 116  }
  0x14   : > { %1761 = vmatprep.subr.mxu0 (!%p400_p9), %v1963_v1  ;;  %1768 = vmatprep.mubr.msk.f32.mxu1 (!%p400_p9), %vm1964_vm1, %v1963_v1  ;;  %v614_v6 = vld [vmem:[%s2287_s6] sm:$0x3f] (!%p400_p9)  ;;  %s1966_s17 = smov (!%p400_p9), 124   ;;  %vm838_vm6 = vcmask (!%p400_p9), 64512   ;;  %vm931_vm7 = vcmask (!%p400_p9), 1043456   ;;  %s1967_s26 = smov (!%p400_p9), 112  }
  0x15   : > { %1767 = vmatpush3.msk.msra.mxu1 (!%p400_p9), %vm462_vm0, %v615_v5  ;;  %v2156_v10 = vld [vmem:[%s2283_s2] sm:$0xff] (!%p400_p9)  ;;  %v1715_v63 = vld [vmem:[%s2286_s5 + $0x8] sm:$0xf] (!%p400_p9)  ;;  %vm1508_vm8 = vcmask (!%p400_p9), 261120   ;;  %s1722_s21 = sshll.u32 (!%p400_p9), %s2066_s12, 4  ;;  %vm1605_vm9 = vcmask (!%p400_p9), 57344  }
  0x16   : > { %1771 = vmatprep.subr.mxu1 (!%p400_p9), %v1963_v1  ;;  %v927_v29 = vld [vmem:[%s2286_s5] sm:$0xf] (!%p400_p9)  ;;  %v1709_v50 = vld [vmem:[%s2286_s5 + $0x4] sm:$0xf] (!%p400_p9) }
  0x19   : > { %s446_s23 = scalar_select %p445_p10, %s2066_s12, 1 }
  0x1a   : > { %s1971_s12 = smov [#allocation3]  }
  0x1b   : > { %s1691_s24 = sshll.u32 %s446_s23, 3 }
  0x1c   : > { %s452_s14 = scalar_lea.vmem %s2299_s1, %s1691_s24  ;;  %s448_s23 = scalar_lea.vmem %s2300_s0, %s1691_s24 }
  0x1d   : > { %v454_v3 = vld [vmem:[%s452_s14] sm:$0xff]  ;;  %s1968_s24 = smov 120   ;;  %s1903_s0 = sshll.u32 %s1971_s12, 4  ;;  %s1904_s0 = int_to_ptr.vmem [resolvable:$false] %s1903_s0 }
  0x1e   : > { %1759 = vmatmul.mubr.msk.f32.vlgmr.msra.gmra.mrb[0].mxu0 %vm458_vm2, %v454_v3  ;;  %v2120_v4 = vld [vmem:[%s448_s23] sm:$0xff]  ;;  %1769 = vmatmul.mubr.msk.f32.vlgmr.msra.gmra.mrb[0].mxu1 %vm458_vm2, %v454_v3  ;;  %s1905_s1 = scalar_lea.vmem %s1904_s0, 32 }
  0x1f   : > { %1762 = vmatpush3.msk.msra.mxu0 %vm540_vm3, %v456_v2  ;;  %1763 = vmatprep.mubr.msk.f32.mxu0 %vm1964_vm1, %v1963_v1 }
  0x20   : > { %1776 = vmatprep.subr.mxu0 %v1963_v1  ;;  %1772 = vmatpush3.msk.msra.mxu1 %vm540_vm3, %v614_v6 }
  0x21   : > { %1773 = vmatprep.mubr.msk.f32.mxu1 %vm1964_vm1, %v1963_v1  ;;  %1781 = vmatprep.subr.mxu1 %v1963_v1 }
  0x22   : > { %1774 = vmatmul.mubr.msk.f32.vlgmr.msra.gmra.mrb[2].mxu1 %vm536_vm4, %v2120_v4 }
  0x23   : > { %1783 = vmatprep.mubr.msk.f32.mxu1 %vm1964_vm1, %v1963_v1 }
  0x26   : > { %1764 = vmatmul.mubr.msk.f32.vlgmr.msra.gmra.mrb[0].mxu0 %vm536_vm4, %v2120_v4 }
  0x27   : > { %1777 = vmatpush3.xpose.msk.msra.mxu0 %vm762_vm5, %v2120_v4  ;;  %1778 = vmatprep.mubr.msk.f32.mxu0 %vm1964_vm1, %v1963_v1 }
  0x28   : > { %1786 = vmatprep.subr.mxu0 %v1963_v1 }
  0xf1   : > { %v685_v20 = vpop.f32.mrb[0].mxu1 }
  0xf2   : > { %v1770_v21 = vpop.f32.mrb[1].mxu1 }
  0xf5   : > { %v758_v22 = vpop.f32.mrb[2].mxu1 }
  0xf6   : > { %v759_v23 = vadd.f32 %v758_v22, %v685_v20  ;;  %v1775_v24 = vpop.f32.mrb[3].mxu1 }
  0xf9   : > { %v2144_v7 = vpop.f32.mrb[0].mxu0 }
  0xfa   : > { %850 = vrot.lane.b32.xlu1 %v2144_v7, %s1965_s16  ;;  %v1765_v8 = vpop.f32.mrb[1].mxu0  ;;  %1779 = vmatmul.mubr.msk.f32.vlgmr.msra.gmra.mrb[2].mxu0 %vm762_vm5, %v2144_v7  ;;  %s1594_s16 = sld [smem:[#allocation2]] }
  0xfb   : > { %1788 = vmatprep.mubr.msk.f32.mxu0 %vm1964_vm1, %v1963_v1  ;;  %1787 = vmatpush3.msk.msra.mxu0 %vm931_vm7, %v927_v29 }
  0xfc   : > { %1796 = vmatprep.subr.mxu0 %v1963_v1 }
  0xfe   : > { %1006 = vrot.lane.b32.xlu1 %v2144_v7, %s1966_s17  ;;  %s1969_s17 = smov 108  }
 0x16c   : > { %v851_v9 = vpop.permute.xlu1 %850 }
 0x16d   : > { %1782 = vmatpush3.msra.mxu1 %v851_v9 }
 0x16e   : > { %1791 = vmatprep.subr.mxu1 %v1963_v1 }
 0x170   : > { %v1007_v28 = vpop.permute.xlu1 %1006 }
 0x1cd   : > { %v834_v11 = vpop.f32.mrb[2].mxu0 }
 0x1ce   : > { %v835_v12 = vadd.f32 %v834_v11, %v2156_v10  ;;  %v1780_v13 = vpop.f32.mrb[3].mxu0 }
 0x1cf   : > { %v1498_v13 = vld [vmem:[%s2290_s9 + $0x8] sm:$0xff] }
 0x1d0   : > { %v839_v14 = vsel %vm838_vm6, %v835_v12, -inf }
 0x1d1   : > { %840 = vmax.xlane.f32.xlu0 %v839_v14 }
 0x25e   : > { %v841_v15 = vpop.xlane.xlu0 %840 }
 0x25f   : > { %v842_v16 = vsub.f32 %v835_v12, %v841_v15  ;;  %v1497_v12 = vld [vmem:[%s2290_s9] sm:$0xff]  ;;  %v1500_v15 = vld [vmem:[%s2290_s9 + $0x18] sm:$0xff] }
 0x260   : > { %v1833_v14 = vpack.c.bf16 %v1498_v13, %v1497_v12 }
 0x261   : > { %v843_v17 = vmul.f32 1.442695, %v842_v16 }
 0x263   : > { %1887 = vpow2.f32 %v843_v17 }
 0x26d   : > { %v1888_v18 = vpop.eup %1887 }
 0x26e   : > { %v845_v19 = vsel %vm838_vm6, %v1888_v18, 0.0 }
 0x26f   : > { %846 = vadd.xlane.f32.xlu0 %v845_v19 }
 0x2fc   : > { %v847_v25 = vpop.xlane.xlu0 %846 }
 0x2fd   : > { %1889 = vrcp.f32 %v847_v25 }
 0x307   : > { %v1890_v26 = vpop.eup %1889 }
 0x308   : > { %v849_v27 = vmul.f32 %v1890_v26, %v1888_v18  ;;  %v1718_v18 = vld [vmem:[%s2289_s8] ss:$0 sm:$0xff] }
 0x30a   : > { %1784 = vmatmul.mubr.msk.f32.vlgmr.msra.gmra.mrb[4].mxu1 %vm838_vm6, %v849_v27  ;;  %v1721_v27 = vld [vmem:[%s2292_s11] ss:$0 sm:$0xff] }
 0x30b   : > { %1792 = vmatpush3.xpose.msk.msra.mxu1 %vm762_vm5, %v2120_v4  ;;  %1793 = vmatprep.mubr.msk.f32.mxu1 %vm1964_vm1, %v1963_v1 }
 0x30c   : > { %1801 = vmatprep.subr.mxu1 %v1963_v1 }
 0x30e   : > { %1794 = vmatmul.mubr.msk.f32.vlgmr.msra.gmra.mrb[6].mxu1 %vm762_vm5, %v1007_v28 }
 0x30f   : > { %1803 = vmatprep.mubr.msk.f32.mxu1 %vm1964_vm1, %v1963_v1  ;;  %1802 = vmatpush3.msk.msra.mxu1 %vm931_vm7, %v1709_v50 }
 0x310   : > { %1811 = vmatprep.subr.mxu1 %v1963_v1 }
 0x3dd   : > { %v922_v30 = vpop.f32.mrb[4].mxu1 }
 0x3de   : > { %v926_v31 = vsub.f32 %v922_v30, %v851_v9  ;;  %v1785_v32 = vpop.f32.mrb[5].mxu1 }
 0x3e0   : > { %1789 = vmatmul.mubr.msk.f32.vlgmr.msra.gmra.mrb[4].mxu0 %vm762_vm5, %v926_v31  ;;  %v1598_v31 = vlaneseq }
 0x3e1   : > { %v1076_v33 = vpop.f32.mrb[6].mxu1  ;;  %1798 = vmatprep.mubr.msk.f32.mxu0 %vm1964_vm1, %v1963_v1 }
 0x3e2   : > { %v1077_v34 = vadd.f32 %v1076_v33, %v2156_v10  ;;  %v1795_v35 = vpop.f32.mrb[7].mxu1  ;;  %v1599_v32 = vand.u32 127, %v1598_v31  ;;  %v1601_v33 = vshrl.u32 %v1598_v31, 7 }
 0x3e4   : > { %v1080_v36 = vsel %vm838_vm6, %v1077_v34, -inf  ;;  %v1602_v35 = vsub.s32 %v1599_v32, %v1601_v33 }
 0x3e5   : > { %1081 = vmax.xlane.f32.xlu0 %v1080_v36 }
 0x3fb   : > { %1091 = vrot.lane.b32.xlu0 %v2144_v7, %s1967_s26 }
 0x3ff   : > { %1247 = vrot.lane.b32.xlu0 %v2144_v7, %s1968_s24  ;;  %s2239_s24 = scalar_lea.hbm %s2294_s13, %s1722_s21 }
 0x472   : > { %v1082_v37 = vpop.xlane.xlu0 %1081 }
 0x473   : > { %v1083_v38 = vsub.f32 %v1077_v34, %v1082_v37  ;;  %v1595_v34 = vstv %s1594_s16 }
 0x475   : > { %v1084_v39 = vmul.f32 1.442695, %v1083_v38 }
 0x476   : > { %v1092_v40 = vpop.permute.xlu0 %1091 }
 0x477   : > { %1891 = vpow2.f32 %v1084_v39  ;;  %1797 = vmatpush3.msra.mxu0 %v1092_v40 }
 0x478   : > { %1806 = vmatprep.subr.mxu0 %v1963_v1 }
 0x47a   : > { %v1248_v49 = vpop.permute.xlu0 %1247 }
 0x481   : > { %v1892_v41 = vpop.eup %1891 }
 0x482   : > { %v1086_v42 = vsel %vm838_vm6, %v1892_v41, 0.0 }
 0x483   : > { %1087 = vadd.xlane.f32.xlu1 %v1086_v42 }
 0x4b3   : > { %v1001_v43 = vpop.f32.mrb[4].mxu0 }
 0x4b4   : > { %v1005_v44 = vadd.f32 %v1001_v43, %v759_v23  ;;  %v1790_v45 = vpop.f32.mrb[5].mxu0  ;;  %v1719_v23 = vld [vmem:[%s2291_s10] ss:$0 sm:$0xff] }
 0x510   : > { %v1088_v46 = vpop.xlane.xlu1 %1087 }
 0x511   : > { %1893 = vrcp.f32 %v1088_v46 }
 0x51b   : > { %v1894_v47 = vpop.eup %1893 }
 0x51c   : > { %v1090_v48 = vmul.f32 %v1894_v47, %v1892_v41 }
 0x51e   : > { %1799 = vmatmul.mubr.msk.f32.vlgmr.msra.gmra.mrb[6].mxu0 %vm838_vm6, %v1090_v48 }
 0x51f   : > { %1807 = vmatpush3.xpose.msk.msra.mxu0 %vm762_vm5, %v2120_v4  ;;  %1808 = vmatprep.mubr.msk.f32.mxu0 %vm1964_vm1, %v1963_v1 }
 0x520   : > { %1816 = vmatprep.subr.mxu0 %v1963_v1 }
 0x522   : > { %1809 = vmatmul.mubr.msk.f32.vlgmr.msra.gmra.mrb[8].mxu0 %vm762_vm5, %v1248_v49 }
 0x523   : > { %1818 = vmatprep.mubr.msk.f32.mxu0 %vm1964_vm1, %v1963_v1  ;;  %1817 = vmatpush3.msk.msra.mxu0 %vm931_vm7, %v1715_v63 }
 0x5f1   : > { %v1163_v51 = vpop.f32.mrb[6].mxu0 }
 0x5f2   : > { %v1167_v52 = vsub.f32 %v1163_v51, %v1092_v40  ;;  %v1800_v53 = vpop.f32.mrb[7].mxu0 }
 0x5f4   : > { %1804 = vmatmul.mubr.msk.f32.vlgmr.msra.gmra.mrb[8].mxu1 %vm762_vm5, %v1167_v52 }
 0x5f5   : > { %v1317_v54 = vpop.f32.mrb[8].mxu0  ;;  %1813 = vmatprep.mubr.msk.f32.mxu1 %vm1964_vm1, %v1963_v1 }
 0x5f6   : > { %v1318_v55 = vadd.f32 %v1317_v54, %v2156_v10  ;;  %v1810_v56 = vpop.f32.mrb[9].mxu0 }
 0x5f8   : > { %v1321_v57 = vsel %vm838_vm6, %v1318_v55, -inf }
 0x5f9   : > { %1322 = vmax.xlane.f32.xlu0 %v1321_v57 }
 0x686   : > { %v1323_v58 = vpop.xlane.xlu0 %1322 }
 0x687   : > { %v1324_v59 = vsub.f32 %v1318_v55, %v1323_v58 }
 0x689   : > { %v1325_v60 = vmul.f32 1.442695, %v1324_v59 }
 0x68b   : > { %1895 = vpow2.f32 %v1325_v60 }
 0x695   : > { %v1896_v61 = vpop.eup %1895 }
 0x696   : > { %v1327_v62 = vsel %vm838_vm6, %v1896_v61, 0.0 }
 0x697   : > { %1328 = vadd.xlane.f32.xlu1 %v1327_v62 }
 0x6a8   : > { %1332 = vrot.lane.b32.xlu1 %v2144_v7, %s1969_s17  ;;  %v1970_v7 = vmov 0.0|0.0   ;;  %s443_s17 = sand.u32 1, %s1953_s28  }
 0x6a9   : > { %s444_s22 = scalar_lea.vmem [#allocation3], %s443_s17  ;;  %s1608_s14 = scalar_lea.sflag [#allocation4], %s443_s17 }
 0x6aa   : > { %s1620_s23 = sshll.u32 %s444_s22, 4  ;;  %s2241_s23 = int_to_ptr.vmem [resolvable:$true] %s1620_s23 }
 0x6ab   : > { %s1899_s16 = scalar_lea.vmem %s2241_s23, 16  ;;  %p1906_p0 = scmp.lt.s32.totalorder %s2241_s23, %s1904_s0 }
 0x6ac   : > { %p1900_p11 = scmp.ne.s32.totalorder %s2241_s23, %s1899_s16  ;;  %p1907_p1 = scmp.lt.s32.totalorder %s1905_s1, %s1899_s16 }
 0x6ae   : > { %p1901_p12 = pnand %p1900_p11, %p2083_p5  ;;  %p1908_p2 = por %p1907_p1, %p1906_p0 }
 0x6b0   : > { %p1902_p13 = pneg %p1901_p12 }
 0x6b2   : > { %p1909_p3 = pnand %p1908_p2, %p1902_p13 }
 0x6c7   : > { %v1242_v0 = vpop.f32.mrb[8].mxu1 }
 0x6c8   : > { %v1246_v2 = vadd.f32 %v1242_v0, %v1005_v44  ;;  %v1805_v3 = vpop.f32.mrb[9].mxu1 }
 0x724   : > { %v1329_v4 = vpop.xlane.xlu1 %1328 }
 0x725   : > { %1897 = vrcp.f32 %v1329_v4 }
 0x728   : > { %v1333_v5 = vpop.permute.xlu1 %1332 }
 0x729   : > { %1812 = vmatpush3.msra.mxu1 %v1333_v5 }
 0x72a   : > { %1832 = vmatprep.subr.bf16.mxu1 %v1970_v7 }
 0x72f   : > { %v1898_v6 = vpop.eup %1897 }
 0x730   : > { %v1331_v8 = vmul.f32 %v1898_v6, %v1896_v61 }
 0x732   : > { %1814 = vmatmul.mubr.msk.f32.vlgmr.msra.gmra.mrb[10].mxu1 %vm838_vm6, %v1331_v8 }
 0x733   : > { %1829 = vmatprep.mubr.msk.f32.mxu1 %vm1964_vm1, %v1963_v1  ;;  %1834 = vmatpush3.bf16.msra.mxu1 %v1833_v14  ;;  %v1499_v1 = vld [vmem:[%s2290_s9 + $0x10] sm:$0xff] }
 0x734   : > { %1835 = vmatprep.subr.bf16.mxu1 %v1970_v7  ;;  %v1836_v16 = vpack.c.bf16 %v1500_v15, %v1499_v1 }
 0x737   : > { %1837 = vmatpush3.bf16.msra.mxu1 %v1836_v16 }
 0x805   : > { %v1404_v9 = vpop.f32.mrb[10].mxu1 }
 0x806   : > { %v1408_v10 = vsub.f32 %v1404_v9, %v1333_v5  ;;  %v1815_v11 = vpop.f32.mrb[11].mxu1 }
 0x808   : > { %1819 = vmatmul.mubr.msk.f32.vlgmr.msra.gmra.mrb[10].mxu0 %vm762_vm5, %v1408_v10 }
 0x8db   : > { %v1483_v17 = vpop.f32.mrb[10].mxu0 }
 0x8dc   : > { %v1487_v19 = vadd.f32 %v1483_v17, %v1246_v2  ;;  %v1820_v20 = vpop.f32.mrb[11].mxu0 }
 0x8de   : > { %v1495_v21 = vadd.f32 %v1718_v18, %v1487_v19 }
 0x8e0   : > { %v1496_v22 = vmax.f32 %v1495_v21, 0.0 }
 0x8e2   : > { %1830 = vmatmul.mubr.msk.f32.vlgmr.msra.gmra.mrb[12].mxu1 %vm1508_vm8, %v1496_v22 }
 0x9b5   : > { %v1578_v24 = vpop.f32.mrb[12].mxu1 }
 0x9b6   : > { %v1579_v25 = vadd.f32 %v1719_v23, %v1578_v24  ;;  %v1831_v26 = vpop.f32.mrb[13].mxu1 }
 0x9b8   : > { %v1582_v28 = vmax.f32 %v1579_v25, 0.0 }
 0x9ba   : > { %v1590_v29 = vmul.f32 %v1721_v27, %v1582_v28 }
 0x9bc   : > { %v1591_v30 = vsel %vm1508_vm8, %v1590_v29, 0.0 }
 0x9bd   : > { %1592 = vadd.xlane.f32.xlu1 %v1591_v30 }
 0xa4a   : > { %v1593_v36 = vpop.xlane.xlu1 %1592 }
 0xa4b   : > { %v1596_v37 = vadd.f32 %v1595_v34, %v1593_v36 }
 0xa4d   : > { %v1603_v38 = vrot.slane %v1596_v37, %v1602_v35 }
 0xa4f   : > { %1606 = vst.msk [vmem:[%s444_s22] sm:$0x1] %vm1605_vm9, %v1603_v38 }
 0xa50   : > { %1912 = shalt.err (!%p1909_p3)
}
 0xa51   : > { %s1913_s17 = scalar_lea.hbm %s2239_s24, 16  ;;  %s1917_s25 = scalar_lea.hbm %s2294_s13, 32 }
 0xa52   : > { %p1914_p4 = scmp.ne.s32.totalorder %s2239_s24, %s1913_s17  ;;  %p1918_p9 = scmp.lt.u32.totalorder %s2239_s24, %s2294_s13 }
 0xa53   : > { %p1919_p10 = scmp.lt.u32.totalorder %s1917_s25, %s1913_s17  ;;  %p1921_p12 = scmp.lt.u32.totalorder %s1913_s17, %s2239_s24 }
 0xa54   : > { %p1915_p7 = pnand %p1914_p4, %p2083_p5 }
 0xa55   : > { %p1920_p11 = por %p1919_p10, %p1918_p9 }
 0xa56   : > { %p1916_p8 = pneg %p1915_p7 }
 0xa57   : > { %p1922_p13 = por %p1921_p12, %p1920_p11 }
 0xa59   : > { %p1923_p0 = pnand %p1922_p13, %p1916_p8 }
 0xa5b   : > { %1926 = shalt.err (!%p1923_p0)
}
 0xa5c   : > { %1840 = dma.vmem_to_hbm [thread:$0]  (%p2083_p5), %s2241_s23, 16, %s2239_s24, %s1608_s14  }
 0xa5d PF: > { %p1846_p1 = scmp.ge.s32.totalorder %s1961_s30, 2  ;;  %s1632_s1 = sand.u32 1, %s1949_s27  }
 0xa5e   : > { %s1633_s16 = scalar_lea.sflag [#allocation4], %s1632_s1 }
 0xa5f   : > { %p1843_p2 = pnand %p1846_p1, %p2087_p6 }
 0xa61   : > { %1944 = dma.done.wait (!%p1843_p2), %s1633_s16, 16  }
 0xa62   : > { %1946 = vsyncadd (!%p1843_p2), %s1633_s16, 4294967280  ;;  %p24_p3 = scmp.ge.s32.totalorder %s2070_s15, 4   ;;  %s2301_s27 = smov %s1953_s28 }
 0xa63   : > { %s2302_s28 = smov %s1957_s29  ;;  %s2303_s29 = smov %s2081_s18 }
 0xa64   : > { %s2304_s30 = smov %s2070_s15  ;;  %26 = sbr.rel (!%p24_p3) target bundleno = 7 (0x7), region = 112 }
 0xa6b   :  { %1637 = vsyncpa [#allocation4], 1 }
 0xa6c   :  { %1639 = vsyncpa [#allocation4 + $0x1], 1 }

</bundles_post_ra>
